<compile_context>
chip_gen: v7x
topology: tpu7x:2x2x1
jax: 0.10.0
libtpu: 0.0.40
codegen_flags: <defaults>
</compile_context>

<pallas_src>
from functools import partial

import numpy as np
import jax
import jax.numpy as jnp
from jax.experimental import pallas as pl
from jax.experimental.pallas import tpu as pltpu

LANE = 128
SUBLANE = 8
MAX_TB = 1024     # max packed rows per grid step
MIN_SPLIT = 64    # only split into >=2 grid steps above this many packed rows


def _cdiv(a, b):
    return -(-a // b)


def _round_up(a, b):
    return _cdiv(a, b) * b


def _tile_rows(num_rows):
    """Return (padded_rows, tile_rows, num_steps) for `num_rows` packed rows."""
    r8 = _round_up(max(num_rows, 1), SUBLANE)
    if r8 < MIN_SPLIT:
        return r8, r8, 1
    nsteps = max(2, _cdiv(r8, MAX_TB))      # >=2 steps so v7x megacore is used
    tb = _round_up(_cdiv(r8, nsteps), SUBLANE)
    return nsteps * tb, tb, nsteps


# ----------------------------------------------------------------------------
# Parameter setup (plain JAX / numpy, runs once at init).
# Reproduces RingGivensRotationLayer: R = I @ G_0 @ ... @ G_{n-1},
# with G_k acting on plane (k, (k+1) % n);  layer(x) = x @ R.T.
# ----------------------------------------------------------------------------
def ring_givens_matrix(angles: jnp.ndarray) -> jnp.ndarray:
    n = angles.shape[0]
    R = jnp.eye(n, dtype=jnp.float32)
    for k in range(n):  # n is small and static
        i, j = k, (k + 1) % n
        c = jnp.cos(angles[k])
        s = jnp.sin(angles[k])
        G = (
            jnp.eye(n, dtype=jnp.float32)
            .at[i, i].set(c)
            .at[j, i].set(s)
            .at[i, j].set(-s)
            .at[j, j].set(c)
        )
        R = R @ G
    return R


def _block_diag(w, n_pad, p):
    """P copies of the (n, n) matrix w on the diagonal of an (n_pad, n_pad) block."""
    w = np.asarray(w, np.float32)
    n = w.shape[0]
    m = np.zeros((n_pad, n_pad), np.float32)
    for q in range(p):
        m[q * n:(q + 1) * n, q * n:(q + 1) * n] = w
    return jnp.asarray(m)


# ----------------------------------------------------------------------------
# Pallas kernels.  One row tile per grid step:
#   x_ref  : (TB, 128)   packed input rows (P logical rows per physical row)
#   m*_ref : (128, 128)  block-diagonal composed rotation matrices
#   h_ref  : (TB, 128)   packed hidden (bottleneck half of previous output slab)
#   w_ref  : (1,) SMEM   sigmoid(hidden_weight)
#   o_ref  : (TB, 256)   fused output: [:, :128]=bottleneck, [:, 128:]=decoded
# ----------------------------------------------------------------------------
def _plain_kernel(x_ref, we_ref, wed_ref, o_ref):
    half = we_ref.shape[1]
    x = x_ref[...]
    # Two independent MXU matmuls (both consume x): bott = x@We, out = x@(We@Wd).
    bott = jnp.dot(x, we_ref[...], preferred_element_type=jnp.float32)
    out = jnp.dot(x, wed_ref[...], preferred_element_type=jnp.float32)
    o_ref[:, :half] = bott.astype(o_ref.dtype)
    o_ref[:, half:] = out.astype(o_ref.dtype)


def _rec_kernel(w_ref, x_ref, we_ref, wd_ref, h_ref, o_ref):
    half = we_ref.shape[1]
    wv = w_ref[0]
    enc = jnp.dot(x_ref[...], we_ref[...], preferred_element_type=jnp.float32)
    bott = (1.0 - wv) * enc + wv * h_ref[...]
    out = jnp.dot(bott, wd_ref[...], preferred_element_type=jnp.float32)
    o_ref[:, :half] = bott.astype(o_ref.dtype)
    o_ref[:, half:] = out.astype(o_ref.dtype)


def _call_encdec(x_p, m1, m2, tb, hidden=None, w_sig=None):
    r_pad, n_pad = x_p.shape
    grid = (r_pad // tb,)
    row_spec = pl.BlockSpec((tb, n_pad), lambda i: (i, 0))
    mat_spec = pl.BlockSpec((n_pad, n_pad), lambda i: (0, 0))
    out_spec = pl.BlockSpec((tb, 2 * n_pad), lambda i: (i, 0))
    out_shape = jax.ShapeDtypeStruct((r_pad, 2 * n_pad), jnp.float32)
    cp = pltpu.CompilerParams(dimension_semantics=("parallel",))

    if hidden is None:
        return pl.pallas_call(
            _plain_kernel,
            out_shape=out_shape,
            grid=grid,
            in_specs=[row_spec, mat_spec, mat_spec],
            out_specs=out_spec,
            compiler_params=cp,
        )(x_p, m1, m2)

    # hidden may be (r_pad, n_pad) or the previous (r_pad, 2*n_pad) output slab;
    # the BlockSpec column index 0 reads only its first 128 lanes (packed bott).
    smem_spec = pl.BlockSpec(memory_space=pltpu.MemorySpace.SMEM)
    hid_spec = pl.BlockSpec((tb, n_pad), lambda i: (i, 0))
    return pl.pallas_call(
        _rec_kernel,
        out_shape=out_shape,
        grid=grid,
        in_specs=[smem_spec, row_spec, mat_spec, mat_spec, hid_spec],
        out_specs=out_spec,
        compiler_params=cp,
    )(w_sig, x_p, m1, m2, hidden)


# ----------------------------------------------------------------------------
# Packing helpers (run inside jit; shapes are static).
# ----------------------------------------------------------------------------
def _pack(x, p, n_pad, r_pad):
    B, n = x.shape
    R = _cdiv(B, p)
    xb = jnp.pad(x, ((0, R * p - B), (0, 0)))     # pad batch to a multiple of P
    xp = xb.reshape(R, p * n)                     # P logical rows per physical row
    return jnp.pad(xp, ((0, r_pad - R), (0, n_pad - p * n)))


def _unpack(half, B, n, p):
    R = _cdiv(B, p)
    return half[:R, :p * n].reshape(R * p, n)[:B]


# ----------------------------------------------------------------------------
# Fused forward paths (single jit each: pack + pallas_call + unpack).
# ----------------------------------------------------------------------------
@partial(jax.jit, static_argnums=(0, 1))
def _fwd_plain(n, p, x, we_bd, wed_bd):
    B = x.shape[0]
    n_pad = we_bd.shape[0]
    r_pad, tb, _ = _tile_rows(_cdiv(B, p))
    x_p = _pack(x, p, n_pad, r_pad)
    res = _call_encdec(x_p, we_bd, wed_bd, tb)
    return _unpack(res[:, :n_pad], B, n, p), _unpack(res[:, n_pad:], B, n, p)


@partial(jax.jit, static_argnums=(0, 1))
def _fwd_rec_first(n, p, x, we_bd, wed_bd, hidden_weight):
    # hidden is all zeros -> bias vanishes; just scale by (1-w), no hidden stream.
    w = jax.nn.sigmoid(hidden_weight[0])
    B = x.shape[0]
    n_pad = we_bd.shape[0]
    r_pad, tb, _ = _tile_rows(_cdiv(B, p))
    x_p = _pack(x, p, n_pad, r_pad)
    res = _call_encdec(x_p, (1.0 - w) * we_bd, (1.0 - w) * wed_bd, tb)
    bott = _unpack(res[:, :n_pad], B, n, p)
    out = _unpack(res[:, n_pad:], B, n, p)
    return bott, out, res


@partial(jax.jit, static_argnums=(0, 1))
def _fwd_rec(n, p, x, we_bd, wd_bd, hidden_slab, hidden_weight):
    # hidden_slab is the previous call's fused output slab; only its first
    # 128 lanes (the packed bottleneck) are streamed into the kernel.
    w = jax.nn.sigmoid(hidden_weight)             # shape (1,) -> SMEM scalar
    B = x.shape[0]
    n_pad = we_bd.shape[0]
    r_pad, tb, _ = _tile_rows(_cdiv(B, p))
    x_p = _pack(x, p, n_pad, r_pad)
    res = _call_encdec(x_p, we_bd, wd_bd, tb, hidden=hidden_slab, w_sig=w)
    bott = _unpack(res[:, :n_pad], B, n, p)
    out = _unpack(res[:, n_pad:], B, n, p)
    return bott, out, res


@partial(jax.jit, static_argnums=(0, 1))
def _fwd_rec_logical(n, p, x, we_bd, wd_bd, h, hidden_weight):
    # Rare path: hidden was set externally / batch changed -> pack it here.
    w = jax.nn.sigmoid(hidden_weight)
    B = x.shape[0]
    n_pad = we_bd.shape[0]
    r_pad, tb, _ = _tile_rows(_cdiv(B, p))
    h2 = jnp.broadcast_to(jnp.reshape(h, (-1, n)), (B, n)).astype(jnp.float32)
    h_p = _pack(h2, p, n_pad, r_pad)
    x_p = _pack(x, p, n_pad, r_pad)
    res = _call_encdec(x_p, we_bd, wd_bd, tb, hidden=h_p, w_sig=w)
    bott = _unpack(res[:, :n_pad], B, n, p)
    out = _unpack(res[:, n_pad:], B, n, p)
    return bott, out, res


# ----------------------------------------------------------------------------
# Module wrapper mirroring ClassicalEncoderDecoder.forward semantics.
# ----------------------------------------------------------------------------
class ClassicalEncoderDecoderPallas:
    def __init__(self, num_features, config, is_recurrent=False, key=None):
        self.num_features = num_features
        self.is_recurrent = is_recurrent
        self.num_blocks = config.get("num_blocks", 1)
        # bottleneck_size only feeds get_trash_indices in the original module;
        # the forward pass does not truncate to it.
        self.bottleneck_size = config.get("bottleneck_size", num_features // 2)

        if key is None:
            key = jax.random.PRNGKey(0)
        keys = jax.random.split(key, 2 * self.num_blocks)
        enc_angles = [jax.random.normal(keys[i], (num_features,), jnp.float32)
                      for i in range(self.num_blocks)]
        dec_angles = [jax.random.normal(keys[self.num_blocks + i], (num_features,), jnp.float32)
                      for i in range(self.num_blocks)]
        self.enc_mats = jnp.stack([ring_givens_matrix(a) for a in enc_angles])
        self.dec_mats = jnp.stack([ring_givens_matrix(a) for a in dec_angles])

        # Precompose + pre-transpose each stack: x @ R0.T @ R1.T ... == x @ W.
        n = num_features
        w_enc = jnp.eye(n, dtype=jnp.float32)
        w_dec = jnp.eye(n, dtype=jnp.float32)
        for b in range(self.num_blocks):
            w_enc = w_enc @ self.enc_mats[b].T
            w_dec = w_dec @ self.dec_mats[b].T
        w_ed = w_enc @ w_dec

        # Row packing: P logical rows per 128-lane physical row, block-diag W.
        self.pack = max(1, LANE // n)
        self.n_pad = _round_up(self.pack * n, LANE)
        self.w_enc_bd = _block_diag(w_enc, self.n_pad, self.pack)
        self.w_dec_bd = _block_diag(w_dec, self.n_pad, self.pack)
        self.w_ed_bd = _block_diag(w_ed, self.n_pad, self.pack)

        self.hidden_weight = jnp.zeros((1,), jnp.float32)   # torch.tensor([0.0])
        self.hidden_state = None
        self._hidden_packed = None
        self._hidden_batch = None

    def reset_hidden_state(self):
        self.hidden_state = None
        self._hidden_packed = None
        self._hidden_batch = None

    def forward(self, x):
        x = jnp.asarray(x, jnp.float32)
        squeeze = x.ndim == 1
        if squeeze:
            x = x[None, :]
        B, n = x.shape
        assert n == self.num_features

        fresh_hidden = self.hidden_state is None
        if fresh_hidden:
            self.hidden_state = jnp.zeros((self.num_features,), jnp.float32)

        if not self.is_recurrent:
            bott, out = _fwd_plain(n, self.pack, x, self.w_enc_bd, self.w_ed_bd)
        else:
            if fresh_hidden:
                bott, out, slab = _fwd_rec_first(
                    n, self.pack, x, self.w_enc_bd, self.w_ed_bd,
                    self.hidden_weight)
            elif self._hidden_packed is not None and self._hidden_batch == B:
                bott, out, slab = _fwd_rec(
                    n, self.pack, x, self.w_enc_bd, self.w_dec_bd,
                    self._hidden_packed, self.hidden_weight)
            else:
                # Rare: hidden set externally or batch changed between steps.
                bott, out, slab = _fwd_rec_logical(
                    n, self.pack, x, self.w_enc_bd, self.w_dec_bd,
                    jnp.asarray(self.hidden_state, jnp.float32),
                    self.hidden_weight)
            self._hidden_packed = slab   # packed bottleneck reused next step
            self._hidden_batch = B
            self.hidden_state = bott[0] if squeeze else bott

        if squeeze:
            bott, out = bott[0], out[0]
        # Returned as device arrays (same values as the numpy outputs of the
        # PyTorch module) to avoid per-call host round-trips.
        return bott, out


# ----------------------------------------------------------------------------
# Pure-JAX reference (un-fused, un-packed) for verification.
# ----------------------------------------------------------------------------
def _reference(x, enc_mats, dec_mats, w, hidden):
    state = x
    for b in range(enc_mats.shape[0]):
        state = state @ enc_mats[b].T
    bott = (1.0 - w) * state + w * hidden
    out = bott
    for b in range(dec_mats.shape[0]):
        out = out @ dec_mats[b].T
    return bott, out


if __name__ == "__main__":
    num_features = 16
    config = {"num_blocks": 2, "bottleneck_size": 8}

    key = jax.random.PRNGKey(0)
    k_params, k_params_r, k_x, k_x2 = jax.random.split(key, 4)
    x = jax.random.normal(k_x, (2, num_features), jnp.float32)
    zeros_h = jnp.zeros((num_features,), jnp.float32)

    # ---- non-recurrent path, small batch ----
    model = ClassicalEncoderDecoderPallas(
        num_features, config, is_recurrent=False, key=k_params)
    bott, out = model.forward(x)
    jax.block_until_ready((bott, out))
    ref_bott, ref_out = _reference(x, model.enc_mats, model.dec_mats, 0.0, zeros_h)
    assert np.allclose(np.asarray(bott), np.asarray(ref_bott), atol=1e-5, rtol=1e-5)
    assert np.allclose(np.asarray(out), np.asarray(ref_out), atol=1e-5, rtol=1e-5)

    # ---- non-recurrent path, bigger odd batch (multi-tile grid + packing pad) ----
    x_big = jax.random.normal(k_x2, (517, num_features), jnp.float32)
    bott_b, out_b = model.forward(x_big)
    jax.block_until_ready((bott_b, out_b))
    ref_bott_b, ref_out_b = _reference(x_big, model.enc_mats, model.dec_mats, 0.0, zeros_h)
    assert np.allclose(np.asarray(bott_b), np.asarray(ref_bott_b), atol=1e-5, rtol=1e-5)
    assert np.allclose(np.asarray(out_b), np.asarray(ref_out_b), atol=1e-5, rtol=1e-5)

    # ---- recurrent path (two steps, batched hidden state) ----
    model_r = ClassicalEncoderDecoderPallas(
        num_features, config, is_recurrent=True, key=k_params_r)
    w_mix = 1.0 / (1.0 + np.exp(-float(model_r.hidden_weight[0])))
    h_ref = zeros_h
    for _ in range(2):
        bott_r, out_r = model_r.forward(x)
        jax.block_until_ready((bott_r, out_r))
        ref_bott_r, ref_out_r = _reference(
            x, model_r.enc_mats, model_r.dec_mats, w_mix, h_ref)
        assert np.allclose(np.asarray(bott_r), np.asarray(ref_bott_r), atol=1e-5, rtol=1e-5)
        assert np.allclose(np.asarray(out_r), np.asarray(ref_out_r), atol=1e-5, rtol=1e-5)
        h_ref = ref_bott_r

    print("KERNEL_OK")
</pallas_src>

<mosaic_0001>
module attributes {stable_mosaic.version = 11 : i64} {
  func.func @_plain_kernel(%arg0: i32, %arg1: memref<8x128xf32, #tpu.memory_space<vmem>>, %arg2: memref<128x128xf32, #tpu.memory_space<vmem>>, %arg3: memref<128x128xf32, #tpu.memory_space<vmem>>, %arg4: memref<8x256xf32, #tpu.memory_space<vmem>>) attributes {dimension_semantics = [#tpu.dimension_semantics<parallel>], iteration_bounds = array<i64: 1>, scalar_prefetch = 0 : i64, scratch_operands = 0 : i64, tpu.core_type = #tpu.core_type<tc>, window_params = [{transform_indices = @transform_0, window_bounds = array<i64: 8, 128>}, {pipeline_mode = #tpu.pipeline_mode<synchronous>, transform_indices = @transform_1, window_bounds = array<i64: 128, 128>}, {pipeline_mode = #tpu.pipeline_mode<synchronous>, transform_indices = @transform_2, window_bounds = array<i64: 128, 128>}, {transform_indices = @transform_3, window_bounds = array<i64: 8, 256>}]} {
    %c0 = arith.constant 0 : index
    %c0_0 = arith.constant 0 : index
    %0 = vector.load %arg1[%c0, %c0_0] : memref<8x128xf32, #tpu.memory_space<vmem>>, vector<8x128xf32>
    %c0_1 = arith.constant 0 : index
    %c0_2 = arith.constant 0 : index
    %1 = vector.load %arg2[%c0_1, %c0_2] : memref<128x128xf32, #tpu.memory_space<vmem>>, vector<128x128xf32>
    %cst = arith.constant dense<0.000000e+00> : vector<8x128xf32>
    %2 = tpu.matmul %0, %1, %cst {dimension_numbers = #tpu.dot_dimension_numbers<[1], [0], [0], [1], [0, 0, 1, 1], [], []>} : vector<8x128xf32>, vector<128x128xf32>, vector<8x128xf32> -> vector<8x128xf32>
    %c0_3 = arith.constant 0 : index
    %c0_4 = arith.constant 0 : index
    %3 = vector.load %arg3[%c0_3, %c0_4] : memref<128x128xf32, #tpu.memory_space<vmem>>, vector<128x128xf32>
    %cst_5 = arith.constant dense<0.000000e+00> : vector<8x128xf32>
    %4 = tpu.matmul %0, %3, %cst_5 {dimension_numbers = #tpu.dot_dimension_numbers<[1], [0], [0], [1], [0, 0, 1, 1], [], []>} : vector<8x128xf32>, vector<128x128xf32>, vector<8x128xf32> -> vector<8x128xf32>
    %c0_6 = arith.constant 0 : index
    %c0_7 = arith.constant 0 : index
    %5 = vector.load %arg4[%c0_6, %c0_7] : memref<8x256xf32, #tpu.memory_space<vmem>>, vector<8x128xf32>
    tpu.vector_store %arg4[%c0_6, %c0_7], %2 {strides = array<i32>} : memref<8x256xf32, #tpu.memory_space<vmem>>, vector<8x128xf32>,
    %c0_8 = arith.constant 0 : index
    %c128 = arith.constant 128 : index
    %6 = vector.load %arg4[%c0_8, %c128] : memref<8x256xf32, #tpu.memory_space<vmem>>, vector<8x128xf32>
    tpu.vector_store %arg4[%c0_8, %c128], %4 {strides = array<i32>} : memref<8x256xf32, #tpu.memory_space<vmem>>, vector<8x128xf32>,
    return
  }
  func.func @transform_0(%arg0: i32) -> (i32, i32) {
    %c0_i32 = arith.constant 0 : i32
    %c0_i32_0 = arith.constant 0 : i32
    return %arg0, %c0_i32 : i32, i32
  }
  func.func @transform_1(%arg0: i32) -> (i32, i32) {
    %c0_i32 = arith.constant 0 : i32
    %c0_i32_0 = arith.constant 0 : i32
    %c0_i32_1 = arith.constant 0 : i32
    return %c0_i32, %c0_i32_0 : i32, i32
  }
  func.func @transform_2(%arg0: i32) -> (i32, i32) {
    %c0_i32 = arith.constant 0 : i32
    %c0_i32_0 = arith.constant 0 : i32
    %c0_i32_1 = arith.constant 0 : i32
    return %c0_i32, %c0_i32_0 : i32, i32
  }
  func.func @transform_3(%arg0: i32) -> (i32, i32) {
    %c0_i32 = arith.constant 0 : i32
    %c0_i32_0 = arith.constant 0 : i32
    return %arg0, %c0_i32 : i32, i32
  }
}

</mosaic_0001>

<bundles_post_ra>
// kernel: _fwd_plain.1
= control target key start
LH: loop header
LB: loop body
LE: loop exit
PB: predicated region body
PF: predicated region fallthrough
CT: control target
= control target key end

     0   :  { %8 = vsyncpa [#allocation3], 0  ;;  %s506_s0 = inlined_call_operand.vmem [shape: f32[8,128], index: 0, kind: input, shape index: {}]   ;;  %s507_s1 = inlined_call_operand.hbm [shape: f32[128,128], index: 1, kind: input, shape index: {}]   ;;  %s508_s2 = inlined_call_operand.hbm [shape: f32[128,128], index: 2, kind: input, shape index: {}]   ;;  %s509_s3 = inlined_call_operand.vmem [shape: f32[8,256], index: 3, kind: output, shape index: {}]  }
   0x1   :  { %9 = vsyncpa [#allocation5], 0  ;;  %s430_s12 = smov [#allocation2]   ;;  %s382_s16 = scalar_lea.hbm %s507_s1, 2048 }
   0x2   :  { %s17_s13 = sshll.u32 %s430_s12, 4  ;;  %p383_p0 = scmp.ne.s32.totalorder %s507_s1, %s382_s16  ;;  %s18_s13 = int_to_ptr.vmem [resolvable:$true] %s17_s13 }
   0x3   :  { %p386_p1 = scmp.lt.u32.totalorder %s382_s16, %s507_s1 }
   0x5   :  { %p388_p2 = pnand %p386_p1, %p383_p0 }
   0x7   :  { %391 = shalt.err (!%p388_p2)
}
   0x8   :  { %s392_s21 = scalar_lea.vmem %s18_s13, 2048  ;;  %p397_p4 = scmp.lt.s32.totalorder %s18_s13, %s18_s13 }
   0x9   :  { %p393_p3 = scmp.ne.s32.totalorder %s18_s13, %s392_s21  ;;  %p398_p5 = scmp.lt.s32.totalorder %s392_s21, %s392_s21 }
   0xb   :  { %p399_p6 = por %p398_p5, %p397_p4 }
   0xd   :  { %p400_p7 = pnand %p399_p6, %p393_p3 }
   0xf   :  { %403 = shalt.err (!%p400_p7)
}
  0x10   :  { %s431_s22 = smov 128   ;;  %s432_s23 = smov 8  }
  0x11   :  { %23 = dma.hbm_to_vmem [thread:$0]  %s507_s1, 2048, %s18_s13, [#allocation3], %s431_s22, %s431_s22, %s432_s23  }
  0x12   :  { %s433_s26 = smov [#allocation4]   ;;  %s404_s30 = scalar_lea.hbm %s508_s2, 2048 }
  0x13   :  { %s29_s27 = sshll.u32 %s433_s26, 4  ;;  %p405_p8 = scmp.ne.s32.totalorder %s508_s2, %s404_s30  ;;  %s30_s27 = int_to_ptr.vmem [resolvable:$true] %s29_s27 }
  0x14   :  { %p408_p9 = scmp.lt.u32.totalorder %s404_s30, %s508_s2 }
  0x16   :  { %p410_p10 = pnand %p408_p9, %p405_p8 }
  0x18   :  { %413 = shalt.err (!%p410_p10)
}
  0x19   :  { %s414_s8 = scalar_lea.vmem %s30_s27, 2048  ;;  %p419_p12 = scmp.lt.s32.totalorder %s30_s27, %s30_s27 }
  0x1a   :  { %p415_p11 = scmp.ne.s32.totalorder %s30_s27, %s414_s8  ;;  %p420_p13 = scmp.lt.s32.totalorder %s414_s8, %s414_s8 }
  0x1c   :  { %p421_p0 = por %p420_p13, %p419_p12 }
  0x1e   :  { %p422_p1 = pnand %p421_p0, %p415_p11 }
  0x20   :  { %425 = shalt.err (!%p422_p1)
}
  0x21   :  { %35 = dma.hbm_to_vmem [thread:$0]  %s508_s2, 2048, %s30_s27, [#allocation5], %s431_s22, %s431_s22, %s432_s23  }
  0x22   :  { %426 = dma.done.wait [#allocation3], 2048  }
  0x23   :  { %427 = vsyncadd [#allocation3], 4294965248 }
  0x24   :  { %428 = dma.done.wait [#allocation5], 2048  }
  0x25   :  { %429 = vsyncadd [#allocation5], 4294965248  ;;  %v434_v0 = vmov 0.0|0.0   ;;  %vm435_vm0 = vmmov 0   ;;  %v436_v1 = vmov 0.0   ;;  %v43_v2 = vld [vmem:[#allocation2] sm:$0xff] }
  0x26   :  { %327 = vmatprep.subr.bf16.mxu0 %v434_v0  ;;  %351 = vmatprep.subr.bf16.mxu1 %v434_v0  ;;  %v44_v3 = vld [vmem:[#allocation2 + $0x8] sm:$0xff]  ;;  %v129_v4 = vld [vmem:[#allocation4] sm:$0xff]  ;;  %v45_v7 = vld [vmem:[#allocation2 + $0x10] sm:$0xff] }
  0x27   :  { %289 = vmatprep.mubr.msk.f32.mxu0 %vm435_vm0, %v436_v1  ;;  %324 = vmatprep.mubr.msk.f32.mxu1 %vm435_vm0, %v436_v1  ;;  %v328_v5 = vpack.c.bf16 %v44_v3, %v43_v2  ;;  %v130_v6 = vld [vmem:[#allocation4 + $0x8] sm:$0xff]  ;;  %v46_v8 = vld [vmem:[#allocation2 + $0x18] sm:$0xff]  ;;  %v131_v10 = vld [vmem:[#allocation4 + $0x10] sm:$0xff] }
  0x28   :  { %v352_v9 = vpack.c.bf16 %v130_v6, %v129_v4  ;;  %v132_v11 = vld [vmem:[#allocation4 + $0x18] sm:$0xff]  ;;  %v331_v12 = vpack.c.bf16 %v46_v8, %v45_v7  ;;  %v47_v14 = vld [vmem:[#allocation2 + $0x20] sm:$0xff]  ;;  %v48_v15 = vld [vmem:[#allocation2 + $0x28] sm:$0xff] }
  0x29   :  { %329 = vmatpush3.bf16.msra.mxu0 %v328_v5  ;;  %v355_v13 = vpack.c.bf16 %v132_v11, %v131_v10  ;;  %v133_v16 = vld [vmem:[#allocation4 + $0x20] sm:$0xff]  ;;  %v134_v17 = vld [vmem:[#allocation4 + $0x28] sm:$0xff]  ;;  %v334_v18 = vpack.c.bf16 %v48_v15, %v47_v14  ;;  %v49_v20 = vld [vmem:[#allocation2 + $0x30] sm:$0xff] }
  0x2a   :  { %353 = vmatpush3.bf16.msra.mxu1 %v352_v9  ;;  %330 = vmatprep.subr.bf16.mxu0 %v434_v0  ;;  %v358_v19 = vpack.c.bf16 %v134_v17, %v133_v16  ;;  %v50_v21 = vld [vmem:[#allocation2 + $0x38] sm:$0xff]  ;;  %v135_v22 = vld [vmem:[#allocation4 + $0x30] sm:$0xff]  ;;  %v51_v26 = vld [vmem:[#allocation2 + $0x40] sm:$0xff] }
  0x2b   :  { %354 = vmatprep.subr.bf16.mxu1 %v434_v0  ;;  %v136_v23 = vld [vmem:[#allocation4 + $0x38] sm:$0xff]  ;;  %v337_v24 = vpack.c.bf16 %v50_v21, %v49_v20  ;;  %v52_v27 = vld [vmem:[#allocation2 + $0x48] sm:$0xff]  ;;  %v137_v28 = vld [vmem:[#allocation4 + $0x40] sm:$0xff] }
  0x2c   :  { %v361_v25 = vpack.c.bf16 %v136_v23, %v135_v22  ;;  %v138_v29 = vld [vmem:[#allocation4 + $0x48] sm:$0xff]  ;;  %v340_v30 = vpack.c.bf16 %v52_v27, %v51_v26  ;;  %v53_v32 = vld [vmem:[#allocation2 + $0x50] sm:$0xff]  ;;  %v54_v33 = vld [vmem:[#allocation2 + $0x58] sm:$0xff] }
  0x2d   :  { %332 = vmatpush3.bf16.msra.mxu0 %v331_v12  ;;  %v364_v31 = vpack.c.bf16 %v138_v29, %v137_v28  ;;  %v139_v34 = vld [vmem:[#allocation4 + $0x50] sm:$0xff]  ;;  %v140_v35 = vld [vmem:[#allocation4 + $0x58] sm:$0xff]  ;;  %v343_v36 = vpack.c.bf16 %v54_v33, %v53_v32  ;;  %v55_v38 = vld [vmem:[#allocation2 + $0x60] sm:$0xff] }
  0x2e   :  { %356 = vmatpush3.bf16.msra.mxu1 %v355_v13  ;;  %333 = vmatprep.subr.bf16.mxu0 %v434_v0  ;;  %v367_v37 = vpack.c.bf16 %v140_v35, %v139_v34  ;;  %v56_v39 = vld [vmem:[#allocation2 + $0x68] sm:$0xff]  ;;  %v141_v40 = vld [vmem:[#allocation4 + $0x60] sm:$0xff]  ;;  %v57_v44 = vld [vmem:[#allocation2 + $0x70] sm:$0xff] }
  0x2f   :  { %357 = vmatprep.subr.bf16.mxu1 %v434_v0  ;;  %v142_v41 = vld [vmem:[#allocation4 + $0x68] sm:$0xff]  ;;  %v346_v42 = vpack.c.bf16 %v56_v39, %v55_v38  ;;  %v58_v45 = vld [vmem:[#allocation2 + $0x78] sm:$0xff]  ;;  %v143_v46 = vld [vmem:[#allocation4 + $0x70] sm:$0xff] }
  0x30   :  { %v370_v43 = vpack.c.bf16 %v142_v41, %v141_v40  ;;  %v144_v47 = vld [vmem:[#allocation4 + $0x78] sm:$0xff]  ;;  %v349_v48 = vpack.c.bf16 %v58_v45, %v57_v44  ;;  %v42_v50 = vld [vmem:[%s506_s0] sm:$0xff] }
  0x31   :  { %335 = vmatpush3.bf16.msra.mxu0 %v334_v18  ;;  %v373_v49 = vpack.c.bf16 %v144_v47, %v143_v46 }
  0x32   :  { %359 = vmatpush3.bf16.msra.mxu1 %v358_v19  ;;  %336 = vmatprep.subr.bf16.mxu0 %v434_v0 }
  0x33   :  { %360 = vmatprep.subr.bf16.mxu1 %v434_v0 }
  0x35   :  { %338 = vmatpush3.bf16.msra.mxu0 %v337_v24 }
  0x36   :  { %362 = vmatpush3.bf16.msra.mxu1 %v361_v25  ;;  %339 = vmatprep.subr.bf16.mxu0 %v434_v0 }
  0x37   :  { %363 = vmatprep.subr.bf16.mxu1 %v434_v0 }
  0x39   :  { %341 = vmatpush3.bf16.msra.mxu0 %v340_v30 }
  0x3a   :  { %365 = vmatpush3.bf16.msra.mxu1 %v364_v31  ;;  %342 = vmatprep.subr.bf16.mxu0 %v434_v0 }
  0x3b   :  { %366 = vmatprep.subr.bf16.mxu1 %v434_v0 }
  0x3d   :  { %344 = vmatpush3.bf16.msra.mxu0 %v343_v36 }
  0x3e   :  { %368 = vmatpush3.bf16.msra.mxu1 %v367_v37  ;;  %345 = vmatprep.subr.bf16.mxu0 %v434_v0 }
  0x3f   :  { %369 = vmatprep.subr.bf16.mxu1 %v434_v0 }
  0x41   :  { %347 = vmatpush3.bf16.msra.mxu0 %v346_v42 }
  0x42   :  { %371 = vmatpush3.bf16.msra.mxu1 %v370_v43  ;;  %348 = vmatprep.subr.bf16.mxu0 %v434_v0 }
  0x43   :  { %372 = vmatprep.subr.bf16.mxu1 %v434_v0 }
  0x45   :  { %350 = vmatpush3.bf16.msra.mxu0 %v349_v48 }
  0x46   :  { %374 = vmatpush3.bf16.msra.mxu1 %v373_v49 }
  0x48   :  { %290 = vmatmul.mubr.f32.vlgmr.msra.gmra.mrb[0].mxu0 %v42_v50 }
  0x49   :  { %325 = vmatmul.mubr.f32.vlgmr.msra.gmra.mrb[0].mxu1 %v42_v50 }
 0x11b   :  { %v125_v51 = vpop.f32.mrb[0].mxu0 }
 0x11c   :  { %215 = vst [vmem:[%s509_s3] sm:$0xff] %v125_v51  ;;  %v211_v52 = vpop.f32.mrb[0].mxu1  ;;  %v291_v53 = vpop.f32.mrb[1].mxu0 }
 0x11d   :  { %216 = vst [vmem:[%s509_s3 + $0x8] sm:$0xff] %v211_v52  ;;  %v326_v54 = vpop.f32.mrb[1].mxu1 }
 0x11e   :  { %221 = vsyncpa [#allocation3], 1 }
 0x11f   :  { %222 = vsyncpa [#allocation5], 1 }

</bundles_post_ra>
